<compile_context>
chip_gen: v7x
topology: tpu7x:2x2x1
jax: 0.10.0
libtpu: 0.0.40
codegen_flags: <defaults>
</compile_context>

<pallas_src>
import functools

import jax
import jax.numpy as jnp
from jax.experimental import pallas as pl
from jax.experimental.pallas import tpu as pltpu

STATE_SIZE = 32      # state_size for the DQN
ACTION_SIZE = 8      # action_size for the DQN
H1 = 128             # first hidden width (already lane-full)
H2 = 64              # second hidden width (padded to 128 for the kernel)
LANE = 128           # TPU lane width


def _round_up(x, m):
    return ((x + m - 1) // m) * m


def dqn_kernel(x_ref, w1_ref, b1_ref, w2_ref, b2_ref, w3_ref, b3_ref, o_ref):
    """Fused 3-layer MLP for one batch tile. bf16 MXU inputs, f32 accumulation."""
    x = x_ref[...]                                                     # [bm, S] bf16
    # Layer 1: [bm, S] @ [S, 128] + [1, 128], ReLU
    h1 = jnp.dot(x, w1_ref[...], preferred_element_type=jnp.float32) + b1_ref[...]
    h1 = jnp.maximum(h1, 0.0).astype(jnp.bfloat16)
    # Layer 2 (padded): [bm, 128] @ [128, 128] + [1, 128], ReLU (pad cols stay 0)
    h2 = jnp.dot(h1, w2_ref[...], preferred_element_type=jnp.float32) + b2_ref[...]
    h2 = jnp.maximum(h2, 0.0).astype(jnp.bfloat16)
    # Layer 3 (padded): [bm, 128] @ [128, 128] + [1, 128]  (lane-dense output)
    out = jnp.dot(h2, w3_ref[...], preferred_element_type=jnp.float32) + b3_ref[...]
    o_ref[...] = out.astype(o_ref.dtype)


@functools.partial(jax.jit, static_argnames=("action_size", "bm"))
def dqn_forward(x, w1, b1, w2p, b2p, w3p, b3p, *, action_size, bm=256):
    """x: [B, state_size] f32.  Params must come from `prepare_params`.

    bm should be a multiple of 128 (v5e MXU) / 256 (v6e MXU); default 256.
    """
    B, S = x.shape
    H1_ = w1.shape[1]
    H2P = w2p.shape[1]
    AP = w3p.shape[1]

    # Effective batch tile: don't blow a tiny batch up to 256 rows.
    Bp8 = _round_up(B, 8)
    bm_eff = min(bm, Bp8)
    Bp = _round_up(B, bm_eff)
    n_tiles = Bp // bm_eff
    # v7x has 2 TensorCores: keep >= 2 grid steps for large batches so the
    # "parallel" axis can shard across both cores (no-op on v5e/v6e).
    if n_tiles == 1 and Bp8 >= 2 * 128:
        bm_eff = _round_up(-(-Bp8 // 2), 128)
        Bp = _round_up(B, bm_eff)
        n_tiles = Bp // bm_eff

    x_b = x.astype(jnp.bfloat16)
    if Bp != B:  # only pad when the batch is not tile-aligned
        x_b = jnp.pad(x_b, ((0, Bp - B), (0, 0)))

    out = pl.pallas_call(
        dqn_kernel,
        out_shape=jax.ShapeDtypeStruct((Bp, AP), jnp.float32),
        grid_spec=pltpu.PrefetchScalarGridSpec(
            num_scalar_prefetch=0,
            grid=(n_tiles,),
            in_specs=[
                pl.BlockSpec((bm_eff, S), lambda i: (i, 0)),   # x tile (bf16)
                pl.BlockSpec((S, H1_), lambda i: (0, 0)),      # W1 (bf16)
                pl.BlockSpec((1, H1_), lambda i: (0, 0)),      # b1 (f32)
                pl.BlockSpec((H1_, H2P), lambda i: (0, 0)),    # W2 padded (bf16)
                pl.BlockSpec((1, H2P), lambda i: (0, 0)),      # b2 padded (f32)
                pl.BlockSpec((H2P, AP), lambda i: (0, 0)),     # W3 padded (bf16)
                pl.BlockSpec((1, AP), lambda i: (0, 0)),       # b3 padded (f32)
            ],
            out_specs=pl.BlockSpec((bm_eff, AP), lambda i: (i, 0)),  # lane-dense store
        ),
        compiler_params=pltpu.CompilerParams(
            dimension_semantics=("parallel",)),
    )(x_b, w1, b1, w2p, b2p, w3p, b3p)

    return out[:B, :action_size]


def prepare_params(w1, b1, w2, b2, w3, b3):
    """Zero-pad H2 and the action dim up to the 128-lane width and cast weights to bf16.

    Zero padding keeps the sliced result exact; do this once, outside the hot path.
    """
    h2 = w2.shape[1]
    a = w3.shape[1]
    h2p = _round_up(h2, LANE)
    ap = _round_up(a, LANE)
    w2p = jnp.pad(w2, ((0, 0), (0, h2p - h2)))
    b2p = jnp.pad(b2, ((0, 0), (0, h2p - h2)))
    w3p = jnp.pad(w3, ((0, h2p - h2), (0, ap - a)))
    b3p = jnp.pad(b3, ((0, 0), (0, ap - a)))
    return (w1.astype(jnp.bfloat16), b1.astype(jnp.float32),
            w2p.astype(jnp.bfloat16), b2p.astype(jnp.float32),
            w3p.astype(jnp.bfloat16), b3p.astype(jnp.float32))


def init_params(key, state_size, action_size):
    """PyTorch Linear default init: U(-1/sqrt(fan_in), +1/sqrt(fan_in)), weights [in, out]."""
    def linear(k, fan_in, fan_out):
        kw, kb = jax.random.split(k)
        bound = 1.0 / jnp.sqrt(fan_in)
        w = jax.random.uniform(kw, (fan_in, fan_out), jnp.float32, -bound, bound)
        b = jax.random.uniform(kb, (1, fan_out), jnp.float32, -bound, bound)
        return w, b

    k1, k2, k3 = jax.random.split(key, 3)
    w1, b1 = linear(k1, state_size, H1)
    w2, b2 = linear(k2, H1, H2)
    w3, b3 = linear(k3, H2, action_size)
    return w1, b1, w2, b2, w3, b3


def dqn_reference_bf16(x, w1, b1, w2p, b2p, w3p, b3p):
    """Same compute path as the kernel (bf16 operands, f32 accumulation)."""
    xb = x.astype(jnp.bfloat16)
    h1 = jnp.maximum(jnp.dot(xb, w1, preferred_element_type=jnp.float32) + b1, 0.0)
    h1 = h1.astype(jnp.bfloat16)
    h2 = jnp.maximum(jnp.dot(h1, w2p, preferred_element_type=jnp.float32) + b2p, 0.0)
    h2 = h2.astype(jnp.bfloat16)
    return jnp.dot(h2, w3p, preferred_element_type=jnp.float32) + b3p


def dqn_reference_f32(x, w1, b1, w2, b2, w3, b3):
    """Original-module semantics in full f32 (for a loose sanity check)."""
    h1 = jnp.maximum(x @ w1 + b1, 0.0)
    h2 = jnp.maximum(h1 @ w2 + b2, 0.0)
    return h2 @ w3 + b3


if __name__ == "__main__":
    key = jax.random.PRNGKey(0)
    kx, kp = jax.random.split(key)

    batch = 2
    x = jax.random.normal(kx, (batch, STATE_SIZE), jnp.float32)
    raw_params = init_params(kp, STATE_SIZE, ACTION_SIZE)
    params = prepare_params(*raw_params)

    out = dqn_forward(x, *params, action_size=ACTION_SIZE)
    out = jax.block_until_ready(out)

    # Tight check against an identically-quantized (bf16 MXU, f32 accum) reference.
    ref_bf16 = dqn_reference_bf16(x, *params)[:, :ACTION_SIZE]
    # Loose check against the original fp32 module semantics.
    ref_f32 = dqn_reference_f32(x, *raw_params)

    assert out.shape == (batch, ACTION_SIZE)
    assert jnp.allclose(out, ref_bf16, atol=1e-3, rtol=1e-3), "mismatch vs bf16 reference"
    assert jnp.allclose(out, ref_f32, atol=1e-1, rtol=1e-1), "mismatch vs f32 reference"

    print("KERNEL_OK")
</pallas_src>

<mosaic_0001>
module attributes {stable_mosaic.version = 11 : i64} {
  func.func @dqn_kernel(%arg0: i32, %arg1: memref<8x32xbf16, #tpu.memory_space<vmem>>, %arg2: memref<32x128xbf16, #tpu.memory_space<vmem>>, %arg3: memref<1x128xf32, #tpu.memory_space<vmem>>, %arg4: memref<128x128xbf16, #tpu.memory_space<vmem>>, %arg5: memref<1x128xf32, #tpu.memory_space<vmem>>, %arg6: memref<128x128xbf16, #tpu.memory_space<vmem>>, %arg7: memref<1x128xf32, #tpu.memory_space<vmem>>, %arg8: memref<8x128xf32, #tpu.memory_space<vmem>>) attributes {dimension_semantics = [#tpu.dimension_semantics<parallel>], iteration_bounds = array<i64: 1>, scalar_prefetch = 0 : i64, scratch_operands = 0 : i64, tpu.core_type = #tpu.core_type<tc>, window_params = [{transform_indices = @transform_0, window_bounds = array<i64: 8, 32>}, {pipeline_mode = #tpu.pipeline_mode<synchronous>, transform_indices = @transform_1, window_bounds = array<i64: 32, 128>}, {pipeline_mode = #tpu.pipeline_mode<synchronous>, transform_indices = @transform_2, window_bounds = array<i64: 1, 128>}, {pipeline_mode = #tpu.pipeline_mode<synchronous>, transform_indices = @transform_3, window_bounds = array<i64: 128, 128>}, {pipeline_mode = #tpu.pipeline_mode<synchronous>, transform_indices = @transform_4, window_bounds = array<i64: 1, 128>}, {pipeline_mode = #tpu.pipeline_mode<synchronous>, transform_indices = @transform_5, window_bounds = array<i64: 128, 128>}, {pipeline_mode = #tpu.pipeline_mode<synchronous>, transform_indices = @transform_6, window_bounds = array<i64: 1, 128>}, {transform_indices = @transform_7, window_bounds = array<i64: 8, 128>}]} {
    %c0 = arith.constant 0 : index
    %c0_0 = arith.constant 0 : index
    %0 = vector.load %arg1[%c0, %c0_0] : memref<8x32xbf16, #tpu.memory_space<vmem>>, vector<8x32xbf16>
    %c0_1 = arith.constant 0 : index
    %c0_2 = arith.constant 0 : index
    %1 = vector.load %arg2[%c0_1, %c0_2] : memref<32x128xbf16, #tpu.memory_space<vmem>>, vector<32x128xbf16>
    %cst = arith.constant dense<0.000000e+00> : vector<8x128xf32>
    %2 = tpu.matmul %0, %1, %cst {dimension_numbers = #tpu.dot_dimension_numbers<[1], [0], [0], [1], [0, 0, 1, 1], [], []>} : vector<8x32xbf16>, vector<32x128xbf16>, vector<8x128xf32> -> vector<8x128xf32>
    %c0_3 = arith.constant 0 : index
    %c0_4 = arith.constant 0 : index
    %3 = vector.load %arg3[%c0_3, %c0_4] : memref<1x128xf32, #tpu.memory_space<vmem>>, vector<1x128xf32>
    %4 = vector.broadcast %3 : vector<1x128xf32> to vector<8x128xf32>
    %5 = arith.addf %2, %4 : vector<8x128xf32>
    %cst_5 = arith.constant 0.000000e+00 : f32
    %6 = vector.broadcast %cst_5 : f32 to vector<8x128xf32>
    %7 = arith.maximumf %5, %6 : vector<8x128xf32>
    %8 = arith.truncf %7 : vector<8x128xf32> to vector<8x128xbf16>
    %c0_6 = arith.constant 0 : index
    %c0_7 = arith.constant 0 : index
    %9 = vector.load %arg4[%c0_6, %c0_7] : memref<128x128xbf16, #tpu.memory_space<vmem>>, vector<128x128xbf16>
    %cst_8 = arith.constant dense<0.000000e+00> : vector<8x128xf32>
    %10 = tpu.matmul %8, %9, %cst_8 {dimension_numbers = #tpu.dot_dimension_numbers<[1], [0], [0], [1], [0, 0, 1, 1], [], []>} : vector<8x128xbf16>, vector<128x128xbf16>, vector<8x128xf32> -> vector<8x128xf32>
    %c0_9 = arith.constant 0 : index
    %c0_10 = arith.constant 0 : index
    %11 = vector.load %arg5[%c0_9, %c0_10] : memref<1x128xf32, #tpu.memory_space<vmem>>, vector<1x128xf32>
    %12 = vector.broadcast %11 : vector<1x128xf32> to vector<8x128xf32>
    %13 = arith.addf %10, %12 : vector<8x128xf32>
    %cst_11 = arith.constant 0.000000e+00 : f32
    %14 = vector.broadcast %cst_11 : f32 to vector<8x128xf32>
    %15 = arith.maximumf %13, %14 : vector<8x128xf32>
    %16 = arith.truncf %15 : vector<8x128xf32> to vector<8x128xbf16>
    %c0_12 = arith.constant 0 : index
    %c0_13 = arith.constant 0 : index
    %17 = vector.load %arg6[%c0_12, %c0_13] : memref<128x128xbf16, #tpu.memory_space<vmem>>, vector<128x128xbf16>
    %cst_14 = arith.constant dense<0.000000e+00> : vector<8x128xf32>
    %18 = tpu.matmul %16, %17, %cst_14 {dimension_numbers = #tpu.dot_dimension_numbers<[1], [0], [0], [1], [0, 0, 1, 1], [], []>} : vector<8x128xbf16>, vector<128x128xbf16>, vector<8x128xf32> -> vector<8x128xf32>
    %c0_15 = arith.constant 0 : index
    %c0_16 = arith.constant 0 : index
    %19 = vector.load %arg7[%c0_15, %c0_16] : memref<1x128xf32, #tpu.memory_space<vmem>>, vector<1x128xf32>
    %20 = vector.broadcast %19 : vector<1x128xf32> to vector<8x128xf32>
    %21 = arith.addf %18, %20 : vector<8x128xf32>
    %c0_17 = arith.constant 0 : index
    %c0_18 = arith.constant 0 : index
    %22 = vector.load %arg8[%c0_17, %c0_18] : memref<8x128xf32, #tpu.memory_space<vmem>>, vector<8x128xf32>
    tpu.vector_store %arg8[%c0_17, %c0_18], %21 {strides = array<i32>} : memref<8x128xf32, #tpu.memory_space<vmem>>, vector<8x128xf32>,
    return
  }
  func.func @transform_0(%arg0: i32) -> (i32, i32) {
    %c0_i32 = arith.constant 0 : i32
    %c0_i32_0 = arith.constant 0 : i32
    return %arg0, %c0_i32 : i32, i32
  }
  func.func @transform_1(%arg0: i32) -> (i32, i32) {
    %c0_i32 = arith.constant 0 : i32
    %c0_i32_0 = arith.constant 0 : i32
    %c0_i32_1 = arith.constant 0 : i32
    return %c0_i32, %c0_i32_0 : i32, i32
  }
  func.func @transform_2(%arg0: i32) -> (i32, i32) {
    %c0_i32 = arith.constant 0 : i32
    %c0_i32_0 = arith.constant 0 : i32
    %c0_i32_1 = arith.constant 0 : i32
    return %c0_i32, %c0_i32_0 : i32, i32
  }
  func.func @transform_3(%arg0: i32) -> (i32, i32) {
    %c0_i32 = arith.constant 0 : i32
    %c0_i32_0 = arith.constant 0 : i32
    %c0_i32_1 = arith.constant 0 : i32
    return %c0_i32, %c0_i32_0 : i32, i32
  }
  func.func @transform_4(%arg0: i32) -> (i32, i32) {
    %c0_i32 = arith.constant 0 : i32
    %c0_i32_0 = arith.constant 0 : i32
    %c0_i32_1 = arith.constant 0 : i32
    return %c0_i32, %c0_i32_0 : i32, i32
  }
  func.func @transform_5(%arg0: i32) -> (i32, i32) {
    %c0_i32 = arith.constant 0 : i32
    %c0_i32_0 = arith.constant 0 : i32
    %c0_i32_1 = arith.constant 0 : i32
    return %c0_i32, %c0_i32_0 : i32, i32
  }
  func.func @transform_6(%arg0: i32) -> (i32, i32) {
    %c0_i32 = arith.constant 0 : i32
    %c0_i32_0 = arith.constant 0 : i32
    %c0_i32_1 = arith.constant 0 : i32
    return %c0_i32, %c0_i32_0 : i32, i32
  }
  func.func @transform_7(%arg0: i32) -> (i32, i32) {
    %c0_i32 = arith.constant 0 : i32
    %c0_i32_0 = arith.constant 0 : i32
    return %arg0, %c0_i32 : i32, i32
  }
}

</mosaic_0001>

<bundles_post_ra>
// kernel: dqn_forward.1
= control target key start
LH: loop header
LB: loop body
LE: loop exit
PB: predicated region body
PF: predicated region fallthrough
CT: control target
= control target key end

     0   :  { %12 = vsyncpa [#allocation3], 0  ;;  %s693_s0 = inlined_call_operand.vmem [shape: bf16[8,32], index: 0, kind: input, shape index: {}]   ;;  %s694_s1 = inlined_call_operand.hbm [shape: bf16[32,128], index: 1, kind: input, shape index: {}]   ;;  %s695_s2 = inlined_call_operand.vmem [shape: f32[1,128], index: 2, kind: input, shape index: {}]   ;;  %s696_s3 = inlined_call_operand.hbm [shape: bf16[128,128], index: 3, kind: input, shape index: {}]   ;;  %s697_s4 = inlined_call_operand.vmem [shape: f32[1,128], index: 4, kind: input, shape index: {}]   ;;  %s698_s5 = inlined_call_operand.hbm [shape: bf16[128,128], index: 5, kind: input, shape index: {}]   ;;  %s699_s6 = inlined_call_operand.vmem [shape: f32[1,128], index: 6, kind: input, shape index: {}]   ;;  %s700_s7 = inlined_call_operand.vmem [shape: f32[8,128], index: 7, kind: output, shape index: {}]  }
   0x1   :  { %13 = vsyncpa [#allocation5], 0  ;;  %s555_s24 = smov [#allocation4]   ;;  %s556_s26 = smov [#allocation2]  }
   0x2   :  { %s35_s25 = sshll.u32 %s555_s24, 4  ;;  %s21_s27 = sshll.u32 %s556_s26, 4  ;;  %s36_s25 = int_to_ptr.vmem [resolvable:$true] %s35_s25  ;;  %s602_s27 = int_to_ptr.vmem [resolvable:$true] %s21_s27 }
   0x3   :  { %s485_s30 = scalar_lea.hbm %s696_s3, 1024 }
   0x4   :  { %p486_p0 = scmp.ne.s32.totalorder %s696_s3, %s485_s30  ;;  %p489_p1 = scmp.lt.u32.totalorder %s485_s30, %s696_s3 }
   0x6   :  { %p491_p2 = pnand %p489_p1, %p486_p0 }
   0x8   :  { %494 = shalt.err (!%p491_p2)
}
   0x9   :  { %s495_s12 = scalar_lea.vmem %s36_s25, 1024  ;;  %p500_p4 = scmp.lt.s32.totalorder %s36_s25, %s36_s25 }
   0xa   :  { %p496_p3 = scmp.ne.s32.totalorder %s36_s25, %s495_s12  ;;  %p501_p5 = scmp.lt.s32.totalorder %s495_s12, %s495_s12 }
   0xc   :  { %p502_p6 = por %p501_p5, %p500_p4 }
   0xe   :  { %p503_p7 = pnand %p502_p6, %p496_p3 }
  0x10   :  { %506 = shalt.err (!%p503_p7)
}
  0x11   :  { %s557_s13 = smov 64   ;;  %s558_s14 = smov 4  }
  0x12   :  { %41 = dma.hbm_to_vmem [thread:$0]  %s696_s3, 1024, %s36_s25, [#allocation5], %s557_s13, %s557_s13, %s558_s14  }
  0x13   :  { %s507_s19 = scalar_lea.hbm %s694_s1, 256 }
  0x14   :  { %p508_p8 = scmp.ne.s32.totalorder %s694_s1, %s507_s19  ;;  %p511_p9 = scmp.lt.u32.totalorder %s507_s19, %s694_s1 }
  0x16   :  { %p513_p10 = pnand %p511_p9, %p508_p8 }
  0x18   :  { %516 = shalt.err (!%p513_p10)
}
  0x19   :  { %s517_s24 = scalar_lea.vmem %s602_s27, 256  ;;  %p522_p12 = scmp.lt.s32.totalorder %s602_s27, %s602_s27 }
  0x1a   :  { %p518_p11 = scmp.ne.s32.totalorder %s602_s27, %s517_s24  ;;  %p523_p13 = scmp.lt.s32.totalorder %s517_s24, %s517_s24 }
  0x1c   :  { %p524_p0 = por %p523_p13, %p522_p12 }
  0x1e   :  { %p525_p1 = pnand %p524_p0, %p518_p11 }
  0x20   :  { %528 = shalt.err (!%p525_p1)
}
  0x21   :  { %27 = dma.hbm_to_vmem [thread:$0]  %s694_s1, 256, %s602_s27, [#allocation3], %s557_s13, %s557_s13, %s558_s14  }
  0x22   :  { %s559_s26 = smov [#allocation6]   ;;  %s529_s8 = scalar_lea.hbm %s698_s5, 1024 }
  0x23   :  { %s49_s28 = sshll.u32 %s559_s26, 4  ;;  %p530_p2 = scmp.ne.s32.totalorder %s698_s5, %s529_s8  ;;  %s50_s28 = int_to_ptr.vmem [resolvable:$true] %s49_s28 }
  0x24   :  { %p533_p3 = scmp.lt.u32.totalorder %s529_s8, %s698_s5 }
  0x26   :  { %p535_p4 = pnand %p533_p3, %p530_p2 }
  0x28   :  { %538 = shalt.err (!%p535_p4)
}
  0x29   :  { %s539_s15 = scalar_lea.vmem %s50_s28, 1024  ;;  %p544_p6 = scmp.lt.s32.totalorder %s50_s28, %s50_s28 }
  0x2a   :  { %p540_p5 = scmp.ne.s32.totalorder %s50_s28, %s539_s15  ;;  %p545_p7 = scmp.lt.s32.totalorder %s539_s15, %s539_s15 }
  0x2c   :  { %p546_p8 = por %p545_p7, %p544_p6 }
  0x2e   :  { %p547_p9 = pnand %p546_p8, %p540_p5 }
  0x30   :  { %550 = shalt.err (!%p547_p9)
}
  0x31   :  { %55 = dma.hbm_to_vmem [thread:$0]  %s698_s5, 1024, %s50_s28, [#allocation5], %s557_s13, %s557_s13, %s558_s14  }
  0x32   :  { %551 = dma.done.wait [#allocation3], 256  }
  0x33   :  { %552 = vsyncadd [#allocation3], 4294967040 }
  0x34   :  { %553 = dma.done.wait [#allocation5], 2048  }
  0x35   :  { %554 = vsyncadd [#allocation5], 4294965248  ;;  %v560_v0 = vmov 0.0   ;;  %vm561_vm0 = vmmov 0   ;;  %v467_v1 = vld [vmem:[#allocation2] sm:$0xff]   ;;  %v468_v2 = vld [vmem:[#allocation2 + $0x8] sm:$0xff]  }
  0x36   :  { %412 = vmatprep.subr.bf16.mxu0 %v560_v0  ;;  %416 = vmatprep.mubr.msk.bf16.mxu0 %vm561_vm0, %v560_v0  ;;  %v469_v3 = vld [vmem:[#allocation4] sm:$0xff]   ;;  %vm92_vm1 = vcmask 261120   ;;  %v470_v4 = vld [vmem:[#allocation4 + $0x8] sm:$0xff]   ;;  %v68_v5 = vld [vmem:[%s693_s0] sm:$0xf] }
  0x37   :  { %420 = vmatprep.subr.bf16.mxu1 %v560_v0  ;;  %436 = vmatprep.mubr.msk.bf16.mxu1 %vm561_vm0, %v560_v0  ;;  %v471_v6 = vld [vmem:[#allocation4 + $0x10] sm:$0xff]   ;;  %v472_v7 = vld [vmem:[#allocation4 + $0x18] sm:$0xff]   ;;  %v473_v8 = vld [vmem:[#allocation4 + $0x20] sm:$0xff]  }
  0x38   :  { %413 = vmatpush3.bf16.msra.mxu0 %v467_v1  ;;  %421 = vmatpush3.bf16.msra.mxu1 %v469_v3  ;;  %v474_v9 = vld [vmem:[#allocation4 + $0x28] sm:$0xff]   ;;  %v475_v10 = vld [vmem:[#allocation4 + $0x30] sm:$0xff]   ;;  %v476_v11 = vld [vmem:[#allocation4 + $0x38] sm:$0xff]  }
  0x39   :  { %414 = vmatprep.subr.bf16.mxu0 %v560_v0  ;;  %422 = vmatprep.subr.bf16.mxu1 %v560_v0  ;;  %v477_v12 = vld [vmem:[#allocation6] sm:$0xff]   ;;  %v478_v13 = vld [vmem:[#allocation6 + $0x8] sm:$0xff]   ;;  %v479_v14 = vld [vmem:[#allocation6 + $0x10] sm:$0xff]  }
  0x3a   :  { %v480_v15 = vld [vmem:[#allocation6 + $0x18] sm:$0xff]   ;;  %v481_v16 = vld [vmem:[#allocation6 + $0x20] sm:$0xff]   ;;  %v482_v17 = vld [vmem:[#allocation6 + $0x28] sm:$0xff]  }
  0x3b   :  { %v369_v18 = vld [vmem:[%s695_s2] ss:$0 sm:$0xff]  ;;  %v484_v27 = vld [vmem:[#allocation6 + $0x38] sm:$0xff]  }
  0x3c   :  { %415 = vmatpush3.bf16.msra.mxu0 %v468_v2  ;;  %423 = vmatpush3.bf16.msra.mxu1 %v470_v4  ;;  %v483_v26 = vld [vmem:[#allocation6 + $0x30] sm:$0xff]  }
  0x3d   :  { %440 = vmatprep.subr.bf16.mxu0 %v560_v0  ;;  %424 = vmatprep.subr.bf16.mxu1 %v560_v0  ;;  %v373_v28 = vld [vmem:[%s697_s4] ss:$0 sm:$0xff] }
  0x3e   :  { %v382_v36 = vld [vmem:[%s699_s6] ss:$0 sm:$0xff] }
  0x3f   :  { %417 = vmatmul.mubr.msk.bf16.vlgmr.msra.gmra.mrb[0].mxu0 %vm92_vm1, %v68_v5 }
  0x40   :  { %456 = vmatprep.mubr.msk.bf16.mxu0 %vm561_vm0, %v560_v0  ;;  %425 = vmatpush3.bf16.msra.mxu1 %v471_v6 }
  0x41   :  { %426 = vmatprep.subr.bf16.mxu1 %v560_v0  ;;  %441 = vmatpush3.bf16.msra.mxu0 %v477_v12 }
  0x42   :  { %442 = vmatprep.subr.bf16.mxu0 %v560_v0 }
  0x44   :  { %427 = vmatpush3.bf16.msra.mxu1 %v472_v7 }
  0x45   :  { %428 = vmatprep.subr.bf16.mxu1 %v560_v0  ;;  %443 = vmatpush3.bf16.msra.mxu0 %v478_v13 }
  0x46   :  { %444 = vmatprep.subr.bf16.mxu0 %v560_v0 }
  0x48   :  { %429 = vmatpush3.bf16.msra.mxu1 %v473_v8 }
  0x49   :  { %430 = vmatprep.subr.bf16.mxu1 %v560_v0  ;;  %445 = vmatpush3.bf16.msra.mxu0 %v479_v14 }
  0x4a   :  { %446 = vmatprep.subr.bf16.mxu0 %v560_v0 }
  0x4c   :  { %431 = vmatpush3.bf16.msra.mxu1 %v474_v9 }
  0x4d   :  { %432 = vmatprep.subr.bf16.mxu1 %v560_v0  ;;  %447 = vmatpush3.bf16.msra.mxu0 %v480_v15 }
  0x4e   :  { %448 = vmatprep.subr.bf16.mxu0 %v560_v0 }
  0x50   :  { %433 = vmatpush3.bf16.msra.mxu1 %v475_v10 }
  0x51   :  { %434 = vmatprep.subr.bf16.mxu1 %v560_v0  ;;  %449 = vmatpush3.bf16.msra.mxu0 %v481_v16 }
  0x52   :  { %450 = vmatprep.subr.bf16.mxu0 %v560_v0 }
  0x54   :  { %435 = vmatpush3.bf16.msra.mxu1 %v476_v11 }
  0x55   :  { %451 = vmatpush3.bf16.msra.mxu0 %v482_v17 }
  0x56   :  { %452 = vmatprep.subr.bf16.mxu0 %v560_v0 }
  0x59   :  { %453 = vmatpush3.bf16.msra.mxu0 %v483_v26 }
  0x5a   :  { %454 = vmatprep.subr.bf16.mxu0 %v560_v0 }
  0x5d   :  { %455 = vmatpush3.bf16.msra.mxu0 %v484_v27 }
 0x112   :  { %v130_v19 = vpop.f32.mrb[0].mxu0 }
 0x113   :  { %v131_v20 = vadd.f32 %v369_v18, %v130_v19  ;;  %v418_v21 = vpop.f32.mrb[1].mxu0 }
 0x114   :  { %v133_v22 = vpop.f32.mrb[2].mxu0 }
 0x115   :  { %v136_v23 = vmax.f32 %v131_v20, 0.0  ;;  %v419_v24 = vpop.f32.mrb[3].mxu0 }
 0x117   :  { %v137_v25 = vpack.c.bf16 %v136_v23, %v136_v23 }
 0x119   :  { %437 = vmatmul.mubr.bf16.vlgmr.msra.gmra.mrb[0].mxu1 %v137_v25 }
 0x1ec   :  { %v243_v29 = vpop.f32.mrb[0].mxu1 }
 0x1ed   :  { %v244_v30 = vadd.f32 %v373_v28, %v243_v29  ;;  %v438_v31 = vpop.f32.mrb[1].mxu1 }
 0x1ee   :  { %v246_v32 = vpop.f32.mrb[2].mxu1 }
 0x1ef   :  { %v249_v33 = vmax.f32 %v244_v30, 0.0  ;;  %v439_v34 = vpop.f32.mrb[3].mxu1 }
 0x1f1   :  { %v250_v35 = vpack.c.bf16 %v249_v33, %v249_v33 }
 0x1f3   :  { %457 = vmatmul.mubr.bf16.vlgmr.msra.gmra.mrb[4].mxu0 %v250_v35 }
 0x2c6   :  { %v356_v37 = vpop.f32.mrb[4].mxu0 }
 0x2c7   :  { %v357_v38 = vadd.f32 %v382_v36, %v356_v37  ;;  %v458_v39 = vpop.f32.mrb[5].mxu0 }
 0x2c8   :  { %v359_v40 = vpop.f32.mrb[6].mxu0 }
 0x2c9   :  { %362 = vst [vmem:[%s700_s7] sm:$0xff] %v357_v38  ;;  %v459_v41 = vpop.f32.mrb[7].mxu0 }
 0x2ca   :  { %367 = vsyncpa [#allocation3], 1 }
 0x2cb   :  { %368 = vsyncpa [#allocation5], 1 }

</bundles_post_ra>
